<compile_context>
chip_gen: v6e
topology: v6e:2x2x1
jax: 0.10.0
libtpu: 0.0.40
codegen_flags: <defaults>
</compile_context>

<pallas_src>
import jax
import jax.numpy as jnp
from jax.experimental import pallas as pl
from jax.experimental.pallas import tpu as pltpu


_VMEM_LIMIT_BYTES = 32 * 1024 * 1024  # explicit scoped-VMEM budget (v5e default is only 16 MiB)


def _choose_tile(E, tile_edges):
    """Lane-aligned tile size, capped by the lane-padded edge count.

    Large tiles amortize the ~0.35 us per-grid-step pipeline overhead; no forced
    multi-step split on single-TensorCore chips.
    """
    te = max(128, (int(tile_edges) // 128) * 128)
    e_lanes = pl.cdiv(int(E), 128) * 128
    return min(te, e_lanes)


# ----------------------------------------------------------------------------
# Primary (fused-gather) kernel: positions VMEM-resident, indices streamed.
# ----------------------------------------------------------------------------
def _edge_geom_fused_kernel(pos_ref, j_ref, i_ref, dvec_ref, dist_ref):
    """Gather + distance vector + L2 norm for one tile of TE edges.

    pos_ref     : (3, N_pad) VMEM-resident positions (xyz on sublanes, atoms on lanes)
    j_ref/i_ref : (1, TE) int32 source/target atom indices for this tile
    dvec_ref    : (TE, 3) output (already in the final (E,3) layout)
    dist_ref    : (1, TE) output (lane-dense)
    """
    pos_t = pos_ref[...].astype(jnp.float32)            # (3, N_pad)
    te = j_ref.shape[1]
    j3 = jnp.broadcast_to(j_ref[...], (3, te))           # sublane broadcast of indices
    i3 = jnp.broadcast_to(i_ref[...], (3, te))
    pj = jnp.take_along_axis(pos_t, j3, axis=1)           # (3, TE) gather from VMEM
    pi = jnp.take_along_axis(pos_t, i3, axis=1)
    d = pj - pi                                           # (3, TE), pure VPU
    dvec_ref[...] = d.T.astype(dvec_ref.dtype)            # XLU relayout; slot has slack (DMA-bound)
    dx = d[0:1, :]
    dy = d[1:2, :]
    dz = d[2:3, :]
    dist_ref[...] = jnp.sqrt(dx * dx + dy * dy + dz * dz).astype(dist_ref.dtype)


def _edge_geometry_fused(pos, j_pad, i_pad, te):
    """Fused path: pos resident in VMEM, edge-index tiles streamed, outputs (E_pad,3)/(1,E_pad)."""
    N = int(pos.shape[0])
    E_pad = int(j_pad.shape[0])
    assert E_pad % te == 0
    N_pad = pl.cdiv(max(N, 1), 128) * 128
    pos_T = pos.T                                          # (3, N): tiny one-time relayout
    if N_pad != N:
        pos_T = jnp.pad(pos_T, ((0, 0), (0, N_pad - N)))
    j2 = j_pad.reshape(1, E_pad)
    i2 = i_pad.reshape(1, E_pad)
    out_dtype = pos.dtype
    return pl.pallas_call(
        _edge_geom_fused_kernel,
        out_shape=(
            jax.ShapeDtypeStruct((E_pad, 3), out_dtype),
            jax.ShapeDtypeStruct((1, E_pad), out_dtype),
        ),
        grid_spec=pltpu.PrefetchScalarGridSpec(
            num_scalar_prefetch=0,
            grid=(E_pad // te,),
            in_specs=[
                pl.BlockSpec((3, N_pad), lambda e: (0, 0)),   # whole pos array stays resident
                pl.BlockSpec((1, te), lambda e: (0, e)),
                pl.BlockSpec((1, te), lambda e: (0, e)),
            ],
            out_specs=[
                pl.BlockSpec((te, 3), lambda e: (e, 0)),
                pl.BlockSpec((1, te), lambda e: (0, e)),
            ],
        ),
        compiler_params=pltpu.CompilerParams(
            dimension_semantics=("parallel",),
            vmem_limit_bytes=_VMEM_LIMIT_BYTES,
        ),
    )(pos_T, j2, i2)


# ----------------------------------------------------------------------------
# Fallback kernel (previously validated): XLA pre-gathered (3, E_pad) tiles.
# ----------------------------------------------------------------------------
def _edge_geom_pregathered_kernel(pj_ref, pi_ref, dvec_ref, dist_ref):
    pj = pj_ref[...].astype(jnp.float32)                  # (3, TE)
    pi = pi_ref[...].astype(jnp.float32)
    d = pj - pi
    dvec_ref[...] = d.astype(dvec_ref.dtype)
    dx = d[0:1, :]
    dy = d[1:2, :]
    dz = d[2:3, :]
    dist_ref[...] = jnp.sqrt(dx * dx + dy * dy + dz * dz).astype(dist_ref.dtype)


def _edge_geometry_pregathered(pos_jT, pos_iT, te):
    E_pad = int(pos_jT.shape[1])
    assert E_pad % te == 0
    out_dtype = pos_jT.dtype
    return pl.pallas_call(
        _edge_geom_pregathered_kernel,
        out_shape=(
            jax.ShapeDtypeStruct((3, E_pad), out_dtype),
            jax.ShapeDtypeStruct((1, E_pad), out_dtype),
        ),
        grid_spec=pltpu.PrefetchScalarGridSpec(
            num_scalar_prefetch=0,
            grid=(E_pad // te,),
            in_specs=[
                pl.BlockSpec((3, te), lambda e: (0, e)),
                pl.BlockSpec((3, te), lambda e: (0, e)),
            ],
            out_specs=[
                pl.BlockSpec((3, te), lambda e: (0, e)),
                pl.BlockSpec((1, te), lambda e: (0, e)),
            ],
        ),
        compiler_params=pltpu.CompilerParams(
            dimension_semantics=("parallel",),
            vmem_limit_bytes=_VMEM_LIMIT_BYTES,
        ),
    )(pos_jT, pos_iT)


# ----------------------------------------------------------------------------
# generate_graph (non-PBC, precomputed edge_index path of BaseModel.generate_graph)
# ----------------------------------------------------------------------------
def generate_graph(pos, natoms, batch, edge_index, use_pbc=False, otf_graph=False,
                   tile_edges=32768):
    """pos: (N,3) float; natoms: (B,) int32; batch: (N,) int32; edge_index: (2,E) int32."""
    assert not use_pbc and not otf_graph
    # TODO(synk): PBC / on-the-fly graph branches (radius_graph_pbc, get_pbc_distances,
    # radius_graph) are not implemented here.

    E = int(edge_index.shape[1])
    j = edge_index[0]
    i = edge_index[1]

    te = _choose_tile(E, tile_edges)
    E_pad = pl.cdiv(E, te) * te
    # Pad *indices* only (cheap int32).  Padded lanes gather atom 0 and compute
    # pos[0]-pos[0]=0; they are sliced off below.
    if E_pad != E:
        j_pad = jnp.pad(j, (0, E_pad - E))
        i_pad = jnp.pad(i, (0, E_pad - E))
    else:
        j_pad, i_pad = j, i

    try:
        # Primary: gather fused into the kernel, distance_vec emitted directly as (E,3).
        dvec, dist = _edge_geometry_fused(pos, j_pad, i_pad, te)
        jax.block_until_ready((dvec, dist))   # surface any deferred device error inside the try
        distance_vec = dvec[:E, :]            # slice only, no transpose pass
        edge_dist = dist[0, :E]
    except Exception:
        # Fallback (always lowers): XLA gather into lane-dense (3, E_pad) tiles.
        pos_T = pos.T
        pos_jT = jnp.take(pos_T, j_pad, axis=1)
        pos_iT = jnp.take(pos_T, i_pad, axis=1)
        dvec_T, dist_T = _edge_geometry_pregathered(pos_jT, pos_iT, te)
        distance_vec = dvec_T[:, :E].T
        edge_dist = dist_T[0, :E]

    cell_offsets = jnp.zeros((E, 3), dtype=pos.dtype)
    cell_offset_distances = jnp.zeros_like(cell_offsets)

    # compute_neighbors: number of edges per graph (by target atom's graph id).
    # Vectorized broadcast-compare + reduction instead of a serializing scatter-add.
    B = int(natoms.shape[0])
    edge_graph = jnp.take(batch, i, axis=0)                              # (E,)
    graph_ids = jnp.arange(B, dtype=edge_graph.dtype)
    neighbors = jnp.sum((edge_graph[None, :] == graph_ids[:, None]).astype(jnp.int32), axis=1)

    return (edge_index, edge_dist, distance_vec,
            cell_offsets, cell_offset_distances, neighbors)


if __name__ == "__main__":
    key = jax.random.PRNGKey(0)
    k_pos, k_j, k_i = jax.random.split(key, 3)

    B = 2              # graphs in batch
    atoms_per = 8
    N = B * atoms_per  # 16 atoms
    E = 64             # edges

    pos = jax.random.normal(k_pos, (N, 3), dtype=jnp.float32) * 2.0
    natoms = jnp.full((B,), atoms_per, dtype=jnp.int32)
    batch = jnp.repeat(jnp.arange(B, dtype=jnp.int32), atoms_per)

    # Random (synthetic) edge index; source and target within the same graph.
    local_j = jax.random.randint(k_j, (E,), 0, atoms_per)
    local_i = jax.random.randint(k_i, (E,), 0, atoms_per)
    graph_of_edge = jnp.repeat(jnp.arange(B, dtype=jnp.int32), E // B)
    j_idx = graph_of_edge * atoms_per + local_j
    i_idx = graph_of_edge * atoms_per + local_i
    edge_index = jnp.stack([j_idx, i_idx], axis=0).astype(jnp.int32)

    out = generate_graph(pos, natoms, batch, edge_index,
                         use_pbc=False, otf_graph=False)
    (edge_index_o, edge_dist, distance_vec,
     cell_offsets, cell_offset_distances, neighbors) = jax.block_until_ready(out)

    # Reference check against plain-JAX semantics of the PyTorch code.
    dvec_ref = pos[edge_index[0]] - pos[edge_index[1]]
    dist_ref = jnp.linalg.norm(dvec_ref, axis=-1)
    neigh_ref = jnp.zeros((B,), jnp.int32).at[batch[edge_index[1]]].add(1)

    assert distance_vec.dtype == pos.dtype and edge_dist.dtype == pos.dtype
    assert distance_vec.shape == (E, 3) and edge_dist.shape == (E,)
    assert jnp.allclose(distance_vec, dvec_ref, atol=1e-5)
    assert jnp.allclose(edge_dist, dist_ref, atol=1e-5)
    assert cell_offsets.shape == (E, 3) and cell_offset_distances.shape == (E, 3)
    assert jnp.array_equal(neighbors, neigh_ref)
    assert int(neighbors.sum()) == E

    # Also exercise a larger, tile-spanning edge count to cover the multi-step grid path.
    E2 = 513
    j2 = jax.random.randint(k_j, (E2,), 0, N).astype(jnp.int32)
    i2 = jax.random.randint(k_i, (E2,), 0, N).astype(jnp.int32)
    ei2 = jnp.stack([j2, i2], axis=0)
    out2 = generate_graph(pos, natoms, batch, ei2, tile_edges=256)
    (_, edge_dist2, distance_vec2, _, _, neighbors2) = jax.block_until_ready(out2)
    dvec_ref2 = pos[j2] - pos[i2]
    assert jnp.allclose(distance_vec2, dvec_ref2, atol=1e-5)
    assert jnp.allclose(edge_dist2, jnp.linalg.norm(dvec_ref2, axis=-1), atol=1e-5)
    assert int(neighbors2.sum()) == E2

    print("KERNEL_OK")
</pallas_src>

<mosaic_0001>
module attributes {stable_mosaic.version = 11 : i64} {
  func.func @_edge_geom_fused_kernel(%arg0: i32, %arg1: memref<3x128xf32, #tpu.memory_space<vmem>>, %arg2: memref<1x128xi32, #tpu.memory_space<vmem>>, %arg3: memref<1x128xi32, #tpu.memory_space<vmem>>, %arg4: memref<128x3xf32, #tpu.memory_space<vmem>>, %arg5: memref<1x128xf32, #tpu.memory_space<vmem>>) attributes {dimension_semantics = [#tpu.dimension_semantics<parallel>], iteration_bounds = array<i64: 1>, scalar_prefetch = 0 : i64, scratch_operands = 0 : i64, tpu.core_type = #tpu.core_type<tc>, window_params = [{pipeline_mode = #tpu.pipeline_mode<synchronous>, transform_indices = @transform_0, window_bounds = array<i64: 3, 128>}, {transform_indices = @transform_1, window_bounds = array<i64: 1, 128>}, {transform_indices = @transform_2, window_bounds = array<i64: 1, 128>}, {transform_indices = @transform_3, window_bounds = array<i64: 128, 3>}, {transform_indices = @transform_4, window_bounds = array<i64: 1, 128>}]} {
    %c0 = arith.constant 0 : index
    %c0_0 = arith.constant 0 : index
    %0 = vector.load %arg1[%c0, %c0_0] : memref<3x128xf32, #tpu.memory_space<vmem>>, vector<3x128xf32>
    %c0_1 = arith.constant 0 : index
    %c0_2 = arith.constant 0 : index
    %1 = vector.load %arg2[%c0_1, %c0_2] : memref<1x128xi32, #tpu.memory_space<vmem>>, vector<1x128xi32>
    %2 = vector.shape_cast %1 : vector<1x128xi32> to vector<1x128xi32>
    %3 = vector.broadcast %2 : vector<1x128xi32> to vector<3x128xi32>
    %c0_3 = arith.constant 0 : index
    %c0_4 = arith.constant 0 : index
    %4 = vector.load %arg3[%c0_3, %c0_4] : memref<1x128xi32, #tpu.memory_space<vmem>>, vector<1x128xi32>
    %5 = vector.shape_cast %4 : vector<1x128xi32> to vector<1x128xi32>
    %6 = vector.broadcast %5 : vector<1x128xi32> to vector<3x128xi32>
    %c0_i32 = arith.constant 0 : i32
    %7 = vector.broadcast %c0_i32 : i32 to vector<3x128xi32>
    %8 = arith.cmpi slt, %3, %7 : vector<3x128xi32>
    %c128_i32 = arith.constant 128 : i32
    %9 = vector.broadcast %c128_i32 : i32 to vector<3x128xi32>
    %10 = arith.addi %3, %9 : vector<3x128xi32>
    %11 = arith.select %8, %10, %3 : vector<3x128xi1>, vector<3x128xi32>
    %12 = vector.shape_cast %11 : vector<3x128xi32> to vector<3x128x1xi32>
    %13 = vector.shape_cast %12 : vector<3x128x1xi32> to vector<3x128xi32>
    %14 = tpu.dynamic_gather %0[%13] in [1] : vector<3x128xf32>, vector<3x128xi32> -> vector<3x128xf32>
    %c0_i32_5 = arith.constant 0 : i32
    %15 = vector.broadcast %c0_i32_5 : i32 to vector<3x128xi32>
    %16 = arith.cmpi slt, %6, %15 : vector<3x128xi32>
    %c128_i32_6 = arith.constant 128 : i32
    %17 = vector.broadcast %c128_i32_6 : i32 to vector<3x128xi32>
    %18 = arith.addi %6, %17 : vector<3x128xi32>
    %19 = arith.select %16, %18, %6 : vector<3x128xi1>, vector<3x128xi32>
    %20 = vector.shape_cast %19 : vector<3x128xi32> to vector<3x128x1xi32>
    %21 = vector.shape_cast %20 : vector<3x128x1xi32> to vector<3x128xi32>
    %22 = tpu.dynamic_gather %0[%21] in [1] : vector<3x128xf32>, vector<3x128xi32> -> vector<3x128xf32>
    %23 = arith.subf %14, %22 : vector<3x128xf32>
    %24 = tpu.transpose %23, [1, 0] : vector<3x128xf32> -> vector<128x3xf32>
    %c0_7 = arith.constant 0 : index
    %c0_8 = arith.constant 0 : index
    %25 = vector.load %arg4[%c0_7, %c0_8] : memref<128x3xf32, #tpu.memory_space<vmem>>, vector<128x3xf32>
    tpu.vector_store %arg4[%c0_7, %c0_8], %24 {strides = array<i32>} : memref<128x3xf32, #tpu.memory_space<vmem>>, vector<128x3xf32>,
    %26 = vector.extract_strided_slice %23 {offsets = [0, 0], sizes = [1, 128], strides = [1, 1]} : vector<3x128xf32> to vector<1x128xf32>
    %27 = vector.extract_strided_slice %23 {offsets = [1, 0], sizes = [1, 128], strides = [1, 1]} : vector<3x128xf32> to vector<1x128xf32>
    %28 = vector.extract_strided_slice %23 {offsets = [2, 0], sizes = [1, 128], strides = [1, 1]} : vector<3x128xf32> to vector<1x128xf32>
    %29 = arith.mulf %26, %26 : vector<1x128xf32>
    %30 = arith.mulf %27, %27 : vector<1x128xf32>
    %31 = arith.addf %29, %30 : vector<1x128xf32>
    %32 = arith.mulf %28, %28 : vector<1x128xf32>
    %33 = arith.addf %31, %32 : vector<1x128xf32>
    %34 = math.sqrt %33 : vector<1x128xf32>
    %c0_9 = arith.constant 0 : index
    %c0_10 = arith.constant 0 : index
    %35 = vector.load %arg5[%c0_9, %c0_10] : memref<1x128xf32, #tpu.memory_space<vmem>>, vector<1x128xf32>
    tpu.vector_store %arg5[%c0_9, %c0_10], %34 {strides = array<i32>} : memref<1x128xf32, #tpu.memory_space<vmem>>, vector<1x128xf32>,
    return
  }
  func.func @transform_0(%arg0: i32) -> (i32, i32) {
    %c0_i32 = arith.constant 0 : i32
    %c0_i32_0 = arith.constant 0 : i32
    %c0_i32_1 = arith.constant 0 : i32
    return %c0_i32, %c0_i32_0 : i32, i32
  }
  func.func @transform_1(%arg0: i32) -> (i32, i32) {
    %c0_i32 = arith.constant 0 : i32
    %c0_i32_0 = arith.constant 0 : i32
    return %c0_i32, %arg0 : i32, i32
  }
  func.func @transform_2(%arg0: i32) -> (i32, i32) {
    %c0_i32 = arith.constant 0 : i32
    %c0_i32_0 = arith.constant 0 : i32
    return %c0_i32, %arg0 : i32, i32
  }
  func.func @transform_3(%arg0: i32) -> (i32, i32) {
    %c0_i32 = arith.constant 0 : i32
    %c0_i32_0 = arith.constant 0 : i32
    return %arg0, %c0_i32 : i32, i32
  }
  func.func @transform_4(%arg0: i32) -> (i32, i32) {
    %c0_i32 = arith.constant 0 : i32
    %c0_i32_0 = arith.constant 0 : i32
    return %c0_i32, %arg0 : i32, i32
  }
}

module attributes {stable_mosaic.version = 11 : i64} {
  func.func @_edge_geom_pregathered_kernel(%arg0: i32, %arg1: memref<3x128xf32, #tpu.memory_space<vmem>>, %arg2: memref<3x128xf32, #tpu.memory_space<vmem>>, %arg3: memref<3x128xf32, #tpu.memory_space<vmem>>, %arg4: memref<1x128xf32, #tpu.memory_space<vmem>>) attributes {dimension_semantics = [#tpu.dimension_semantics<parallel>], iteration_bounds = array<i64: 1>, scalar_prefetch = 0 : i64, scratch_operands = 0 : i64, tpu.core_type = #tpu.core_type<tc>, window_params = [{transform_indices = @transform_0, window_bounds = array<i64: 3, 128>}, {transform_indices = @transform_1, window_bounds = array<i64: 3, 128>}, {transform_indices = @transform_2, window_bounds = array<i64: 3, 128>}, {transform_indices = @transform_3, window_bounds = array<i64: 1, 128>}]} {
    %c0 = arith.constant 0 : index
    %c0_0 = arith.constant 0 : index
    %0 = vector.load %arg1[%c0, %c0_0] : memref<3x128xf32, #tpu.memory_space<vmem>>, vector<3x128xf32>
    %c0_1 = arith.constant 0 : index
    %c0_2 = arith.constant 0 : index
    %1 = vector.load %arg2[%c0_1, %c0_2] : memref<3x128xf32, #tpu.memory_space<vmem>>, vector<3x128xf32>
    %2 = arith.subf %0, %1 : vector<3x128xf32>
    %c0_3 = arith.constant 0 : index
    %c0_4 = arith.constant 0 : index
    %3 = vector.load %arg3[%c0_3, %c0_4] : memref<3x128xf32, #tpu.memory_space<vmem>>, vector<3x128xf32>
    tpu.vector_store %arg3[%c0_3, %c0_4], %2 {strides = array<i32>} : memref<3x128xf32, #tpu.memory_space<vmem>>, vector<3x128xf32>,
    %4 = vector.extract_strided_slice %2 {offsets = [0, 0], sizes = [1, 128], strides = [1, 1]} : vector<3x128xf32> to vector<1x128xf32>
    %5 = vector.extract_strided_slice %2 {offsets = [1, 0], sizes = [1, 128], strides = [1, 1]} : vector<3x128xf32> to vector<1x128xf32>
    %6 = vector.extract_strided_slice %2 {offsets = [2, 0], sizes = [1, 128], strides = [1, 1]} : vector<3x128xf32> to vector<1x128xf32>
    %7 = arith.mulf %4, %4 : vector<1x128xf32>
    %8 = arith.mulf %5, %5 : vector<1x128xf32>
    %9 = arith.addf %7, %8 : vector<1x128xf32>
    %10 = arith.mulf %6, %6 : vector<1x128xf32>
    %11 = arith.addf %9, %10 : vector<1x128xf32>
    %12 = math.sqrt %11 : vector<1x128xf32>
    %c0_5 = arith.constant 0 : index
    %c0_6 = arith.constant 0 : index
    %13 = vector.load %arg4[%c0_5, %c0_6] : memref<1x128xf32, #tpu.memory_space<vmem>>, vector<1x128xf32>
    tpu.vector_store %arg4[%c0_5, %c0_6], %12 {strides = array<i32>} : memref<1x128xf32, #tpu.memory_space<vmem>>, vector<1x128xf32>,
    return
  }
  func.func @transform_0(%arg0: i32) -> (i32, i32) {
    %c0_i32 = arith.constant 0 : i32
    %c0_i32_0 = arith.constant 0 : i32
    return %c0_i32, %arg0 : i32, i32
  }
  func.func @transform_1(%arg0: i32) -> (i32, i32) {
    %c0_i32 = arith.constant 0 : i32
    %c0_i32_0 = arith.constant 0 : i32
    return %c0_i32, %arg0 : i32, i32
  }
  func.func @transform_2(%arg0: i32) -> (i32, i32) {
    %c0_i32 = arith.constant 0 : i32
    %c0_i32_0 = arith.constant 0 : i32
    return %c0_i32, %arg0 : i32, i32
  }
  func.func @transform_3(%arg0: i32) -> (i32, i32) {
    %c0_i32 = arith.constant 0 : i32
    %c0_i32_0 = arith.constant 0 : i32
    return %c0_i32, %arg0 : i32, i32
  }
}

</mosaic_0001>

<bundles_post_ra>
// kernel: tpu_custom_call.1
= control target key start
LH: loop header
LB: loop body
LE: loop exit
PB: predicated region body
PF: predicated region fallthrough
CT: control target
= control target key end

     0   :  { %10 = vsyncpa [#allocation3], 0  ;;  %s293_s0 = inlined_call_operand.hbm [shape: f32[3,128], index: 0, kind: input, shape index: {}]   ;;  %s294_s1 = inlined_call_operand.vmem [shape: s32[1,128], index: 1, kind: input, shape index: {}]   ;;  %s295_s2 = inlined_call_operand.vmem [shape: s32[1,128], index: 2, kind: input, shape index: {}]   ;;  %s296_s3 = inlined_call_operand.vmem [shape: f32[128,3], index: 3, kind: output, shape index: {0}]   ;;  %s297_s4 = inlined_call_operand.hbm [shape: f32[1,128], index: 4, kind: output, shape index: {1}]  }
   0x1   :  { %11 = vsyncpa [#allocation4], 0  ;;  %s190_s15 = smov [#allocation2]  }
   0x2   :  { %s18_s16 = sshll.u32 %s190_s15, 4  ;;  %s19_s16 = int_to_ptr.vmem [resolvable:$true] %s18_s16 }
   0x3   :  { %s154_s17 = scalar_lea.vmem %s19_s16, 64  ;;  %p159_p1 = scmp.lt.s32.totalorder %s19_s16, %s19_s16 }
   0x4   :  { %p155_p0 = scmp.ne.s32.totalorder %s19_s16, %s154_s17  ;;  %p160_p2 = scmp.lt.s32.totalorder %s154_s17, %s154_s17 }
   0x6   :  { %p161_p3 = por %p160_p2, %p159_p1 }
   0x8   :  { %p162_p4 = pnand %p161_p3, %p155_p0 }
   0xa   :  { %165 = shalt.err (!%p162_p4)
}
   0xb   :  { %21 = dma.hbm_to_vmem [thread:$0]  %s293_s0, 64, %s19_s16, [#allocation3]  }
   0xc   :  { %186 = dma.done.wait [#allocation3], 64  }
   0xd   :  { %187 = vsyncadd [#allocation3], 4294967232  ;;  %v137_v0 = vld [vmem:[%s294_s1] ss:$0 sm:$0xff]  ;;  %s191_s0 = smov [#allocation5]  }
   0xe   :  { %vm40_vm0 = vcmp.lt.s32.totalorder %v137_v0, 0  ;;  %v41_v1 = vadd.s32 128, %v137_v0  ;;  %v138_v2 = vld [vmem:[%s295_s2] ss:$0 sm:$0xff]  ;;  %s126_s1 = sshll.u32 %s191_s0, 4  ;;  %s127_s1 = int_to_ptr.vmem [resolvable:$true] %s126_s1 }
   0xf   :  { %v29_v4 = vld [vmem:[#allocation2] sm:$0x7]  ;;  %v47_v5 = vadd.s32 128, %v138_v2  ;;  %vm46_vm1 = vcmp.lt.s32.totalorder %v138_v2, 0  ;;  %s166_s2 = scalar_lea.vmem %s127_s1, 16  ;;  %s170_s24 = scalar_lea.vmem %s127_s1, 32 }
  0x10   :  { %v42_v3 = vsel %vm40_vm0, %v41_v1, %v137_v0  ;;  %p167_p5 = scmp.ne.s32.totalorder %s127_s1, %s166_s2  ;;  %p171_p6 = scmp.lt.s32.totalorder %s127_s1, %s127_s1 }
  0x11   :  { %142 = vset.pattern.permute.xlu0 %v42_v3  ;;  %v48_v6 = vsel %vm46_vm1, %v47_v5, %v138_v2  ;;  %p172_p7 = scmp.lt.s32.totalorder %s170_s24, %s166_s2 }
  0x13   :  { %p173_p8 = por %p172_p7, %p171_p6 }
  0x15   :  { %44 = vperm.xlu0 %142, %v29_v4   ;;  %p174_p9 = pnand %p173_p8, %p167_p5 }
  0x19   :  { %143 = vset.pattern.permute.xlu0 %v48_v6 }
  0x1d   :  { %50 = vperm.xlu0 %143, %v29_v4  }
  0x90   :  { %v45_v7 = vpop.permute.xlu0 %44 }
  0x98   :  { %v51_v8 = vpop.permute.xlu0 %50 }
  0x99   :  { %v52_v9 = vsub.f32 %v45_v7, %v51_v8 }
  0x9b   :  { %v102_v10 = vmul.f32 %v52_v9, %v52_v9  ;;  %53 = vxpose.xlu1.b32.start.end [1/1] (short) %v52_v9, 128 }
  0x9d   :  { %v104_v11 = vrot.slane %v102_v10, 1  ;;  %v107_v13 = vrot.slane %v102_v10, 2 }
  0x9f   :  { %v106_v12 = vadd.f32 %v104_v11, %v102_v10 }
  0xa1   :  { %v109_v14 = vadd.f32 %v107_v13, %v106_v12 }
  0xa3   :  { %144 = vrsqrt.f32 %v109_v14  ;;  %vm112_vm2 = vcmp.eq.f32.partialorder %v109_v14, inf  ;;  %v115_v17 = vand.u32 2147483648, %v109_v14  ;;  %vm114_vm3 = vcmp.eq.f32.partialorder %v109_v14, 0.0 }
  0xb0   :  { %v145_v15 = vpop.eup %144 }
  0xb1   :  { %v111_v16 = vmul.f32 %v145_v15, %v109_v14 }
  0xb3   :  { %v113_v18 = vsel %vm112_vm2, %v109_v14, %v111_v16 }
  0xb4   :  { %v116_v19 = vsel %vm114_vm3, %v115_v17, %v113_v18 }
  0xb5   :  { %117 = vst [vmem:[#allocation5] sm:$0x1] %v116_v19 }
  0xb6   :  { %177 = shalt.err (!%p174_p9)
}
  0xb7   :  { %129 = dma.vmem_to_hbm [thread:$0]  %s127_s1, 16, %s297_s4, [#allocation4]   ;;  %vm85_vm4 = vcmask 23552  }
 0x117   :  { %v69_v20 = vpop.trf.xlu1 }
 0x118   :  { %86 = vst.msk [vmem:[%s296_s3] sm:$0xff] %vm85_vm4, %v69_v20 }
 0x11b   :  { %v70_v21 = vpop.trf.xlu1 }
 0x11c   :  { %87 = vst.msk [vmem:[%s296_s3 + $0x8] sm:$0xff] %vm85_vm4, %v70_v21 }
 0x11f   :  { %v71_v22 = vpop.trf.xlu1 }
 0x120   :  { %88 = vst.msk [vmem:[%s296_s3 + $0x10] sm:$0xff] %vm85_vm4, %v71_v22 }
 0x123   :  { %v72_v23 = vpop.trf.xlu1 }
 0x124   :  { %89 = vst.msk [vmem:[%s296_s3 + $0x18] sm:$0xff] %vm85_vm4, %v72_v23 }
 0x127   :  { %v73_v24 = vpop.trf.xlu1 }
 0x128   :  { %90 = vst.msk [vmem:[%s296_s3 + $0x20] sm:$0xff] %vm85_vm4, %v73_v24 }
 0x12b   :  { %v74_v25 = vpop.trf.xlu1 }
 0x12c   :  { %91 = vst.msk [vmem:[%s296_s3 + $0x28] sm:$0xff] %vm85_vm4, %v74_v25 }
 0x12f   :  { %v75_v26 = vpop.trf.xlu1 }
 0x130   :  { %92 = vst.msk [vmem:[%s296_s3 + $0x30] sm:$0xff] %vm85_vm4, %v75_v26 }
 0x133   :  { %v76_v27 = vpop.trf.xlu1 }
 0x134   :  { %93 = vst.msk [vmem:[%s296_s3 + $0x38] sm:$0xff] %vm85_vm4, %v76_v27 }
 0x137   :  { %v77_v28 = vpop.trf.xlu1 }
 0x138   :  { %94 = vst.msk [vmem:[%s296_s3 + $0x40] sm:$0xff] %vm85_vm4, %v77_v28 }
 0x13b   :  { %v78_v29 = vpop.trf.xlu1 }
 0x13c   :  { %95 = vst.msk [vmem:[%s296_s3 + $0x48] sm:$0xff] %vm85_vm4, %v78_v29 }
 0x13f   :  { %v79_v30 = vpop.trf.xlu1 }
 0x140   :  { %96 = vst.msk [vmem:[%s296_s3 + $0x50] sm:$0xff] %vm85_vm4, %v79_v30 }
 0x143   :  { %v80_v31 = vpop.trf.xlu1 }
 0x144   :  { %97 = vst.msk [vmem:[%s296_s3 + $0x58] sm:$0xff] %vm85_vm4, %v80_v31 }
 0x147   :  { %v81_v32 = vpop.trf.xlu1 }
 0x148   :  { %98 = vst.msk [vmem:[%s296_s3 + $0x60] sm:$0xff] %vm85_vm4, %v81_v32 }
 0x14b   :  { %v82_v33 = vpop.trf.xlu1 }
 0x14c   :  { %99 = vst.msk [vmem:[%s296_s3 + $0x68] sm:$0xff] %vm85_vm4, %v82_v33 }
 0x14f   :  { %v83_v34 = vpop.trf.xlu1 }
 0x150   :  { %100 = vst.msk [vmem:[%s296_s3 + $0x70] sm:$0xff] %vm85_vm4, %v83_v34 }
 0x153   :  { %v84_v35 = vpop.trf.xlu1 }
 0x154   :  { %101 = vst.msk [vmem:[%s296_s3 + $0x78] sm:$0xff] %vm85_vm4, %v84_v35 }
 0x155   :  { %188 = dma.done.wait [#allocation4], 16  }
 0x156   :  { %189 = vsyncadd [#allocation4], 4294967280 }
 0x157   :  { %135 = vsyncpa [#allocation3], 1 }
 0x158   :  { %136 = vsyncpa [#allocation4], 1 }

// kernel: tpu_custom_call.1
= control target key start
LH: loop header
LB: loop body
LE: loop exit
PB: predicated region body
PF: predicated region fallthrough
CT: control target
= control target key end

     0   :  { %9 = vsyncpa [#allocation3], 0  ;;  %s219_s0 = inlined_call_operand.hbm [shape: f32[3,128], index: 0, kind: input, shape index: {}]   ;;  %s220_s1 = inlined_call_operand.hbm [shape: f32[3,128], index: 1, kind: input, shape index: {}]   ;;  %s221_s2 = inlined_call_operand.hbm [shape: f32[3,128], index: 2, kind: output, shape index: {0}]   ;;  %s222_s3 = inlined_call_operand.hbm [shape: f32[1,128], index: 3, kind: output, shape index: {1}]  }
   0x1   :  { %10 = vsyncpa [#allocation6], 0 }
   0x2   :  { %11 = vsyncpa [#allocation4], 0 }
   0x3   :  { %12 = vsyncpa [#allocation9], 0  ;;  %s183_s12 = smov [#allocation2]   ;;  %s184_s14 = smov [#allocation5]  }
   0x4   :  { %s19_s13 = sshll.u32 %s183_s12, 4  ;;  %s29_s15 = sshll.u32 %s184_s14, 4  ;;  %s20_s13 = int_to_ptr.vmem [resolvable:$true] %s19_s13  ;;  %s30_s15 = int_to_ptr.vmem [resolvable:$true] %s29_s15 }
   0x5   :  { %s103_s16 = scalar_lea.vmem %s20_s13, 64  ;;  %p108_p1 = scmp.lt.s32.totalorder %s20_s13, %s20_s13 }
   0x6   :  { %p104_p0 = scmp.ne.s32.totalorder %s20_s13, %s103_s16  ;;  %p109_p2 = scmp.lt.s32.totalorder %s103_s16, %s103_s16 }
   0x8   :  { %p110_p3 = por %p109_p2, %p108_p1 }
   0xa   :  { %p111_p4 = pnand %p110_p3, %p104_p0 }
   0xc   :  { %114 = shalt.err (!%p111_p4)
}
   0xd   :  { %22 = dma.hbm_to_vmem [thread:$0]  %s219_s0, 64, %s20_s13, [#allocation3]  }
   0xe   :  { %s123_s19 = scalar_lea.vmem %s30_s15, 64  ;;  %p128_p6 = scmp.lt.s32.totalorder %s30_s15, %s30_s15 }
   0xf   :  { %p124_p5 = scmp.ne.s32.totalorder %s30_s15, %s123_s19  ;;  %p129_p7 = scmp.lt.s32.totalorder %s123_s19, %s123_s19 }
  0x11   :  { %p130_p8 = por %p129_p7, %p128_p6 }
  0x13   :  { %p131_p9 = pnand %p130_p8, %p124_p5 }
  0x15   :  { %134 = shalt.err (!%p131_p9)
}
  0x16   :  { %32 = dma.hbm_to_vmem [thread:$0]  %s220_s1, 64, %s30_s15, [#allocation6]  }
  0x17   :  { %175 = dma.done.wait [#allocation3], 64  }
  0x18   :  { %176 = vsyncadd [#allocation3], 4294967232 }
  0x19   :  { %177 = dma.done.wait [#allocation6], 64  }
  0x1a   :  { %178 = vsyncadd [#allocation6], 4294967232  ;;  %s185_s22 = smov [#allocation7]   ;;  %v39_v0 = vld [vmem:[#allocation2] sm:$0x7] }
  0x1b   :  { %s65_s23 = sshll.u32 %s185_s22, 4  ;;  %v40_v1 = vld [vmem:[#allocation5] sm:$0x7]  ;;  %s66_s23 = int_to_ptr.vmem [resolvable:$true] %s65_s23 }
  0x1c   :  { %v41_v2 = vsub.f32 %v39_v0, %v40_v1  ;;  %s135_s0 = scalar_lea.vmem %s66_s23, 64  ;;  %p140_p11 = scmp.lt.s32.totalorder %s66_s23, %s66_s23 }
  0x1d   :  { %p136_p10 = scmp.ne.s32.totalorder %s66_s23, %s135_s0  ;;  %p141_p12 = scmp.lt.s32.totalorder %s135_s0, %s135_s0 }
  0x1e   :  { %42 = vst [vmem:[#allocation7] sm:$0x7] %v41_v2  ;;  %v43_v3 = vmul.f32 %v41_v2, %v41_v2 }
  0x1f   :  { %p142_p13 = por %p141_p12, %p140_p11 }
  0x21   :  { %p143_p0 = pnand %p142_p13, %p136_p10 }
  0x23   :  { %146 = shalt.err (!%p143_p0)
}
  0x24   :  { %68 = dma.vmem_to_hbm [thread:$0]  %s66_s23, 64, %s221_s2, [#allocation4]   ;;  %v45_v4 = vrot.slane %v43_v3, 1  ;;  %v48_v5 = vrot.slane %v43_v3, 2 }
  0x25   :  { %s186_s25 = smov [#allocation8]  }
  0x26   :  { %v47_v6 = vadd.f32 %v45_v4, %v43_v3  ;;  %s75_s26 = sshll.u32 %s186_s25, 4  ;;  %s76_s26 = int_to_ptr.vmem [resolvable:$true] %s75_s26 }
  0x27   :  { %s155_s27 = scalar_lea.vmem %s76_s26, 16  ;;  %s159_s28 = scalar_lea.vmem %s76_s26, 32 }
  0x28   :  { %v50_v7 = vadd.f32 %v48_v5, %v47_v6  ;;  %p156_p1 = scmp.ne.s32.totalorder %s76_s26, %s155_s27  ;;  %p160_p2 = scmp.lt.s32.totalorder %s76_s26, %s76_s26 }
  0x29   :  { %p161_p3 = scmp.lt.s32.totalorder %s159_s28, %s155_s27 }
  0x2a   :  { %93 = vrsqrt.f32 %v50_v7  ;;  %vm53_vm0 = vcmp.eq.f32.partialorder %v50_v7, inf  ;;  %v56_v9 = vand.u32 2147483648, %v50_v7  ;;  %vm55_vm1 = vcmp.eq.f32.partialorder %v50_v7, 0.0 }
  0x2b   :  { %p162_p4 = por %p161_p3, %p160_p2 }
  0x2d   :  { %p163_p5 = pnand %p162_p4, %p156_p1 }
  0x37   :  { %v94_v8 = vpop.eup %93 }
  0x38   :  { %v52_v10 = vmul.f32 %v94_v8, %v50_v7 }
  0x3a   :  { %v54_v11 = vsel %vm53_vm0, %v50_v7, %v52_v10 }
  0x3b   :  { %v57_v12 = vsel %vm55_vm1, %v56_v9, %v54_v11 }
  0x3c   :  { %58 = vst [vmem:[#allocation8] sm:$0x1] %v57_v12 }
  0x3d   :  { %166 = shalt.err (!%p163_p5)
}
  0x3e   :  { %78 = dma.vmem_to_hbm [thread:$0]  %s76_s26, 16, %s222_s3, [#allocation9]  }
  0x3f   :  { %179 = dma.done.wait [#allocation4], 64  }
  0x40   :  { %180 = vsyncadd [#allocation4], 4294967232 }
  0x41   :  { %181 = dma.done.wait [#allocation9], 16  }
  0x42   :  { %182 = vsyncadd [#allocation9], 4294967280 }
  0x43   :  { %85 = vsyncpa [#allocation3], 1 }
  0x44   :  { %86 = vsyncpa [#allocation6], 1 }
  0x45   :  { %87 = vsyncpa [#allocation4], 1 }
  0x46   :  { %88 = vsyncpa [#allocation9], 1 }

</bundles_post_ra>
